<compile_context>
chip_gen: v6e
topology: v6e:2x2x1
jax: 0.10.0
libtpu: 0.0.40
codegen_flags: <defaults>
</compile_context>

<pallas_src>
import functools

import jax
import jax.numpy as jnp
from jax.experimental import pallas as pl
from jax.experimental.pallas import tpu as pltpu

HIDDEN = 32            # encoder hidden / encoding width
PARAM_HIDDEN = 64      # TermNet hidden width
MPN_DEPTH = 3

TERM_ROW_TILE = 1024   # TermNet rows per grid step

MPN_ROW_TILE = 512     # MPN atom-row tile
MPN_K_TILE = 1024      # MPN adjacency-column (reduction) tile
assert MPN_K_TILE % MPN_ROW_TILE == 0

VMEM_LIMIT = 32 * 1024 * 1024   # scoped VMEM budget; safe on v5e / v6e / v7x

EPS = 1e-12            # OPLS (c0 + c1) denominator safety


def _round_up(x, m):
    return ((x + m - 1) // m) * m


def _mpn_tiling(n):
    """Padded atom count + (row_tile, k_tile) so both divide n_pad exactly."""
    n_pad = _round_up(max(n, 8), 128)
    if n_pad <= MPN_ROW_TILE:
        rt, kt = n_pad, n_pad
    elif n_pad <= MPN_K_TILE:
        n_pad = _round_up(n_pad, MPN_ROW_TILE)
        rt, kt = MPN_ROW_TILE, n_pad
    else:
        n_pad = _round_up(n_pad, MPN_K_TILE)
        rt, kt = MPN_ROW_TILE, MPN_K_TILE
    # v7x has 2 TensorCores: make sure the "parallel" row axis has >= 2 tiles.
    if n_pad // rt == 1 and n_pad >= 256:
        rt = n_pad // 2          # n_pad multiple of 128 -> rt multiple of 64
    return n_pad, rt, kt


def _mpn_k_band(n, n_pad, rt, kt, mol_spans):
    """Per-row-tile starting k-block of the block-diagonal band + band width.

    Off-band adjacency tiles are exactly zero, so restricting the reduction grid
    to the band is mathematically identical while skipping their HBM reads."""
    n_row = n_pad // rt
    n_k_total = n_pad // kt
    if not mol_spans:
        return jnp.zeros((n_row,), jnp.int32), n_k_total
    starts, widths = [], []
    for i in range(n_row):
        r_lo, r_hi = i * rt, min((i + 1) * rt, n)
        band_lo = band_hi = None
        if r_lo < n:
            for (s, sz) in mol_spans:
                if s < r_hi and s + sz > r_lo:          # molecule overlaps row tile
                    band_lo = s if band_lo is None else min(band_lo, s)
                    band_hi = s + sz if band_hi is None else max(band_hi, s + sz)
        if band_lo is None:
            starts.append(0)
            widths.append(1)
        else:
            kb_lo = band_lo // kt
            kb_hi = -(-band_hi // kt)
            starts.append(kb_lo)
            widths.append(kb_hi - kb_lo)
    nb = max(1, max(widths))
    starts = [max(0, min(s, n_k_total - nb)) for s in starts]
    return jnp.asarray(starts, jnp.int32), nb


# ----------------------------------------------------------------------------
# Pallas kernels
# ----------------------------------------------------------------------------

def mpn_input_kernel(f_ref, wi_ref, h0_ref, h0b_ref):
    """h0 = relu(f @ Wi); also emits the bf16 copy used as the first message h."""
    h0 = jnp.maximum(
        jnp.dot(f_ref[...], wi_ref[...], preferred_element_type=jnp.float32), 0.0)
    h0_ref[...] = h0
    h0b_ref[...] = h0.astype(jnp.bfloat16)


def _mpn_accumulate(kstart_ref, adj_ref, h_ref, acc_ref, kt):
    """Shared adj@h band accumulation (grid = (row_tiles, band_k_tiles))."""
    i = pl.program_id(0)
    k = pl.program_id(1)

    @pl.when(k == 0)
    def _():
        acc_ref[...] = jnp.zeros_like(acc_ref)

    # h is resident (full-extent bf16); slice the rows matching this adj k-block.
    off = (kstart_ref[i] + k) * kt
    off = pl.multiple_of(off, 128)
    h_blk = h_ref[pl.ds(off, kt), :]
    acc_ref[...] += jnp.dot(adj_ref[...], h_blk, preferred_element_type=jnp.float32)


def mpn_message_kernel(kstart_ref, adj_ref, h_ref, h0_ref, wh_ref, out_ref,
                       acc_ref, *, kt):
    """One message-passing step: out = relu(h0 + (adj @ h) @ Wh), stored in bf16."""
    _mpn_accumulate(kstart_ref, adj_ref, h_ref, acc_ref, kt)

    @pl.when(pl.program_id(1) == pl.num_programs(1) - 1)
    def _():
        h_new = jnp.maximum(
            h0_ref[...] + jnp.dot(acc_ref[...], wh_ref[...],
                                  preferred_element_type=jnp.float32), 0.0)
        out_ref[...] = h_new.astype(out_ref.dtype)


def mpn_message_final_kernel(kstart_ref, adj_ref, h_ref, h0_ref, wh_ref,
                             f_ref, wof_ref, woh_ref, bo_ref, out_ref,
                             acc_ref, *, kt):
    """Last message pass with the encoder output layer fused into the finalize."""
    _mpn_accumulate(kstart_ref, adj_ref, h_ref, acc_ref, kt)

    @pl.when(pl.program_id(1) == pl.num_programs(1) - 1)
    def _():
        h_new = jnp.maximum(
            h0_ref[...] + jnp.dot(acc_ref[...], wh_ref[...],
                                  preferred_element_type=jnp.float32), 0.0)
        out_ref[...] = jnp.maximum(
            jnp.dot(f_ref[...], wof_ref[...], preferred_element_type=jnp.float32)
            + jnp.dot(h_new, woh_ref[...], preferred_element_type=jnp.float32)
            + bo_ref[...], 0.0)


def termnet_kernel(x_ref, w1_ref, b1_ref, w2_ref, b2_ref, w3_ref, b3_ref,
                   o_ref, *, final_act):
    """Fused 3-layer MLP (TermNet): relu, relu, [softplus | identity].

    bf16 MXU inputs (weights passed in bf16, activations cast in-kernel), f32
    accumulation and biases; narrow (d_out <= 4) output written directly."""
    x = x_ref[...].astype(jnp.bfloat16)
    h = jnp.maximum(
        jnp.dot(x, w1_ref[...], preferred_element_type=jnp.float32)
        + b1_ref[...], 0.0)
    h = jnp.maximum(
        jnp.dot(h.astype(jnp.bfloat16), w2_ref[...],
                preferred_element_type=jnp.float32) + b2_ref[...], 0.0)
    y = jnp.dot(h.astype(jnp.bfloat16), w3_ref[...],
                preferred_element_type=jnp.float32) + b3_ref[...]
    if final_act == "softplus":
        y = jnp.logaddexp(y, 0.0)
    o_ref[...] = y


# ----------------------------------------------------------------------------
# Wrappers
# ----------------------------------------------------------------------------

def mpn_apply(f, adj_bf16, params, mol_spans=None):
    """Dense atom-level message passing encoder, row x band-k tiled."""
    wi, wh, wo_f, wo_h, bo = params
    n, atom_fdim = f.shape
    n_pad, rt, kt = _mpn_tiling(n)
    n_row = n_pad // rt

    f_p = jnp.pad(f, ((0, n_pad - n), (0, 0)))      # (n, fdim) pad only; tiny
    if adj_bf16.shape != (n_pad, n_pad):
        # Fallback only: build_batch normally constructs adj already padded.
        adj_bf16 = jnp.pad(adj_bf16, ((0, n_pad - adj_bf16.shape[0]),
                                      (0, n_pad - adj_bf16.shape[1])))

    kstart, n_k_band = _mpn_k_band(n, n_pad, rt, kt, mol_spans)

    row_params = pltpu.CompilerParams(
        dimension_semantics=("parallel",), vmem_limit_bytes=VMEM_LIMIT)
    msg_params = pltpu.CompilerParams(
        dimension_semantics=("parallel", "arbitrary"), vmem_limit_bytes=VMEM_LIMIT)

    # ---- input layer: h0 (f32 residual) + bf16 copy ----
    h0_f32, h_bf16 = pl.pallas_call(
        mpn_input_kernel,
        out_shape=(jax.ShapeDtypeStruct((n_pad, HIDDEN), jnp.float32),
                   jax.ShapeDtypeStruct((n_pad, HIDDEN), jnp.bfloat16)),
        grid=(n_row,),
        in_specs=[
            pl.BlockSpec((rt, atom_fdim), lambda i: (i, 0)),
            pl.BlockSpec((atom_fdim, HIDDEN), lambda i: (0, 0)),
        ],
        out_specs=(pl.BlockSpec((rt, HIDDEN), lambda i: (i, 0)),
                   pl.BlockSpec((rt, HIDDEN), lambda i: (i, 0))),
        compiler_params=row_params,
    )(f_p, wi)

    # ---- message passing specs (P2: band-limited k axis via scalar prefetch) ----
    def _msg_specs(with_output_layer):
        specs = [
            pl.BlockSpec((rt, kt), lambda i, k, ks: (i, ks[i] + k)),        # adj tile
            pl.BlockSpec((n_pad, HIDDEN), lambda i, k, ks: (0, 0)),         # full h bf16
            pl.BlockSpec((rt, HIDDEN), lambda i, k, ks: (i, 0)),            # h0 tile
            pl.BlockSpec((HIDDEN, HIDDEN), lambda i, k, ks: (0, 0)),        # Wh
        ]
        if with_output_layer:
            specs += [
                pl.BlockSpec((rt, atom_fdim), lambda i, k, ks: (i, 0)),     # f tile
                pl.BlockSpec((atom_fdim, HIDDEN), lambda i, k, ks: (0, 0)),  # Wo_f
                pl.BlockSpec((HIDDEN, HIDDEN), lambda i, k, ks: (0, 0)),     # Wo_h
                pl.BlockSpec((1, HIDDEN), lambda i, k, ks: (0, 0)),          # bo
            ]
        return specs

    msg_call = pl.pallas_call(
        functools.partial(mpn_message_kernel, kt=kt),
        out_shape=jax.ShapeDtypeStruct((n_pad, HIDDEN), jnp.bfloat16),
        grid_spec=pltpu.PrefetchScalarGridSpec(
            num_scalar_prefetch=1, grid=(n_row, n_k_band),
            in_specs=_msg_specs(False),
            out_specs=pl.BlockSpec((rt, HIDDEN), lambda i, k, ks: (i, 0)),
            scratch_shapes=[pltpu.VMEM((rt, HIDDEN), jnp.float32)]),
        compiler_params=msg_params,
    )

    final_call = pl.pallas_call(
        functools.partial(mpn_message_final_kernel, kt=kt),
        out_shape=jax.ShapeDtypeStruct((n_pad, HIDDEN), jnp.float32),
        grid_spec=pltpu.PrefetchScalarGridSpec(
            num_scalar_prefetch=1, grid=(n_row, n_k_band),
            in_specs=_msg_specs(True),
            out_specs=pl.BlockSpec((rt, HIDDEN), lambda i, k, ks: (i, 0)),
            scratch_shapes=[pltpu.VMEM((rt, HIDDEN), jnp.float32)]),
        compiler_params=msg_params,
    )

    h = h_bf16
    for _ in range(MPN_DEPTH - 1):
        h = msg_call(kstart, adj_bf16, h, h0_f32, wh)
    encoding = final_call(kstart, adj_bf16, h, h0_f32, wh, f_p, wo_f, wo_h, bo)
    return encoding[:n]


def termnet_apply(x, params, final_act=None):
    """Apply TermNet MLP over rows; large row tiles, narrow direct output."""
    w1, b1, w2, b2, w3, b3 = params
    n, d_in = x.shape
    d_h = w1.shape[1]
    d_out = w3.shape[1]
    if n == 0:
        return jnp.zeros((0, d_out), jnp.float32)

    rt = min(TERM_ROW_TILE, _round_up(max(n, 8), 8))
    n_pad = _round_up(n, rt)
    n_tiles = n_pad // rt
    x_p = jnp.pad(x, ((0, n_pad - n), (0, 0)))

    out = pl.pallas_call(
        functools.partial(termnet_kernel, final_act=final_act),
        out_shape=jax.ShapeDtypeStruct((n_pad, d_out), jnp.float32),
        grid=(n_tiles,),
        in_specs=[
            pl.BlockSpec((rt, d_in), lambda i: (i, 0)),
            pl.BlockSpec((d_in, d_h), lambda i: (0, 0)),
            pl.BlockSpec((1, d_h), lambda i: (0, 0)),
            pl.BlockSpec((d_h, d_h), lambda i: (0, 0)),
            pl.BlockSpec((1, d_h), lambda i: (0, 0)),
            pl.BlockSpec((d_h, d_out), lambda i: (0, 0)),
            pl.BlockSpec((1, d_out), lambda i: (0, 0)),
        ],
        out_specs=pl.BlockSpec((rt, d_out), lambda i: (i, 0)),
        compiler_params=pltpu.CompilerParams(
            dimension_semantics=("parallel",), vmem_limit_bytes=VMEM_LIMIT),
    )(x_p, w1.astype(jnp.bfloat16), b1, w2.astype(jnp.bfloat16), b2,
      w3.astype(jnp.bfloat16), b3)
    return out[:n]


# ----------------------------------------------------------------------------
# Pure-JAX f32 reference (for numerical validation of the bf16 kernel path)
# ----------------------------------------------------------------------------

def _mpn_reference(f, adj_f32, params):
    wi, wh, wo_f, wo_h, bo = params
    h0 = jnp.maximum(f @ wi, 0.0)
    h = h0
    for _ in range(MPN_DEPTH):
        h = jnp.maximum(h0 + (adj_f32 @ h) @ wh, 0.0)
    return jnp.maximum(f @ wo_f + h @ wo_h + bo, 0.0)


def _termnet_reference(x, params, final_act=None):
    w1, b1, w2, b2, w3, b3 = params
    h = jnp.maximum(x @ w1 + b1, 0.0)
    h = jnp.maximum(h @ w2 + b2, 0.0)
    y = h @ w3 + b3
    if final_act == "softplus":
        y = jnp.logaddexp(y, 0.0)
    return y


# ----------------------------------------------------------------------------
# Deterministic parameter construction
# ----------------------------------------------------------------------------

def make_mpn_params(key, atom_fdim):
    k1, k2, k3, k4 = jax.random.split(key, 4)
    wi = 0.1 * jax.random.normal(k1, (atom_fdim, HIDDEN), jnp.float32)
    wh = 0.1 * jax.random.normal(k2, (HIDDEN, HIDDEN), jnp.float32)
    wo_f = 0.1 * jax.random.normal(k3, (atom_fdim, HIDDEN), jnp.float32)
    wo_h = 0.1 * jax.random.normal(k4, (HIDDEN, HIDDEN), jnp.float32)
    bo = jnp.zeros((1, HIDDEN), jnp.float32)
    return wi, wh, wo_f, wo_h, bo


def make_termnet_params(key, input_mult, pred_output):
    d_in = HIDDEN * input_mult
    k1, k2, k3 = jax.random.split(key, 3)
    w1 = 0.1 * jax.random.normal(k1, (d_in, PARAM_HIDDEN), jnp.float32)
    b1 = jnp.zeros((1, PARAM_HIDDEN), jnp.float32)
    w2 = 0.1 * jax.random.normal(k2, (PARAM_HIDDEN, PARAM_HIDDEN), jnp.float32)
    b2 = jnp.zeros((1, PARAM_HIDDEN), jnp.float32)
    w3 = 0.1 * jax.random.normal(k3, (PARAM_HIDDEN, pred_output), jnp.float32)
    b3 = jnp.zeros((1, pred_output), jnp.float32)
    return w1, b1, w2, b2, w3, b3


# ----------------------------------------------------------------------------
# HiTPoly forward (batched graph -> per-molecule force-field parameters)
# ----------------------------------------------------------------------------

ARGS = dict(
    bond_output=2, angle_output=2, dihedral_output=4, pair_output=1,
    sep_bond_pred=False, sep_angle_pred=False, sep_dihedral_pred=False,
    bond_scaling=True, bond_scaling_param_1=700.0, bond_scaling_param_2=100.0,
    bond_term_linearization=True, bond_min_OPLS=0.9, bond_max_OPLS=1.8,
    angle_scaling=True, angle_scaling_param_1=100.0, angle_scaling_param_2=50.0,
    angle_term_linearization=True, angle_min_OPLS=90.0, angle_max_OPLS=130.0,
    dihedral_cutoff=0.5,
    ff_type="opls",
)


def hitpoly_forward(batch, mpn_params, bond_p, angle_p, dihedral_p, pair_p,
                    use_pallas=True):
    f = batch["atom_features"]          # (N_total, atom_fdim) f32
    n_total = f.shape[0]
    mols = batch["molecules"]
    indeces = batch["mol_indeces"]

    if use_pallas:
        encoding = mpn_apply(f, batch["adjacency"], mpn_params, indeces)
        tnet = termnet_apply
    else:
        adj_f32 = batch["adjacency"].astype(jnp.float32)[:n_total, :n_total]
        encoding = _mpn_reference(f, adj_f32, mpn_params)
        tnet = _termnet_reference

    # ---- batch entity indices across ALL molecules (global atom indices) so each
    #      TermNet type is exactly one pallas_call per batch.
    bonds_g = jnp.concatenate(
        [m["bonds"] + s for m, (s, _) in zip(mols, indeces)], axis=0)
    angles_g = jnp.concatenate(
        [m["angles"] + s for m, (s, _) in zip(mols, indeces)], axis=0)
    dih_g = jnp.concatenate(
        [m["dihedrals"] + s for m, (s, _) in zip(mols, indeces)], axis=0)

    # ---- bonds: encode[bonds].sum(1) -> bondnet -> OPLS scaling/linearization
    encoded_bonds = encoding[bonds_g].sum(1)                  # (NB, HIDDEN)
    tb = tnet(encoded_bonds, bond_p, final_act="softplus")
    tb = (tb * ARGS["bond_scaling_param_1"] + ARGS["bond_scaling_param_2"]) / 2
    c0, c1 = tb[:, 0], tb[:, 1]
    bond_params_all = jnp.stack(
        [c0 + c1,
         (c0 * ARGS["bond_min_OPLS"] + c1 * ARGS["bond_max_OPLS"]) / (c0 + c1 + EPS)],
        axis=1)

    # ---- angles: cat([encode[angles[:,[0,2]]].sum(1), encode[angles[:,1]]])
    ea = jnp.concatenate(
        [encoding[angles_g[:, jnp.array([0, 2])]].sum(1),
         encoding[angles_g[:, 1]]], axis=1)                   # (NA, 2*HIDDEN)
    ta = tnet(ea, angle_p, final_act="softplus")
    ta = (ta * ARGS["angle_scaling_param_1"] + ARGS["angle_scaling_param_2"]) / 2
    a0, a1 = ta[:, 0], ta[:, 1]
    angle_params_all = jnp.stack(
        [a0 + a1,
         (a0 * ARGS["angle_min_OPLS"] + a1 * ARGS["angle_max_OPLS"]) / (a0 + a1 + EPS)],
        axis=1)

    # ---- dihedrals: forward + flipped encodings in ONE call, averaged, cutoff
    nd = dih_g.shape[0]
    dih_fwd = encoding[dih_g].reshape(nd, -1)                 # (ND, 4*HIDDEN)
    dih_rev = encoding[dih_g[:, ::-1]].reshape(nd, -1)
    td_both = tnet(jnp.concatenate([dih_fwd, dih_rev], axis=0),
                   dihedral_p, final_act=None)
    td = (td_both[:nd] + td_both[nd:]) / 2
    # cutoff: literal translation of the torch expression
    cut = ARGS["dihedral_cutoff"]
    a = jnp.abs(td) - cut
    dihedral_params_all = jnp.sign(td) * jax.nn.relu(
        jax.nn.relu(a) + jnp.minimum(a, cut * jnp.ones_like(td)))

    # ---- pairs: pairnet over the whole batch encoding
    tp_all = tnet(encoding, pair_p, final_act=None)           # (N_total, 1)

    # ---- split batched results back per molecule (plain JAX slicing glue)
    results = []
    b_off = ang_off = d_off = 0
    for mol, (a_start, a_size) in zip(mols, indeces):
        nb = mol["bonds"].shape[0]
        na = mol["angles"].shape[0]
        ndh = mol["dihedrals"].shape[0]

        charge = mol["lj_params"][:, 0:1]
        lj = mol["lj_params"][:, 1:]
        pair_params = jnp.concatenate(
            [tp_all[a_start:a_start + a_size], lj], axis=1)

        results.append(dict(
            true_charge=charge,
            bond_params=bond_params_all[b_off:b_off + nb],
            angle_params=angle_params_all[ang_off:ang_off + na],
            dihedral_params=dihedral_params_all[d_off:d_off + ndh],
            pair_params=pair_params,
        ))
        b_off += nb
        ang_off += na
        d_off += ndh
    return results


# ----------------------------------------------------------------------------
# Demo
# ----------------------------------------------------------------------------

def make_chain_molecule(key, n_atoms):
    bonds = jnp.array([[i, i + 1] for i in range(n_atoms - 1)], jnp.int32)
    angles = jnp.array([[i, i + 1, i + 2] for i in range(n_atoms - 2)], jnp.int32)
    dihedrals = jnp.array([[i, i + 1, i + 2, i + 3]
                           for i in range(n_atoms - 3)], jnp.int32)
    lj = jax.random.uniform(key, (n_atoms, 3), jnp.float32, 0.1, 1.0)
    return dict(n_atoms=n_atoms, bonds=bonds, angles=angles,
                dihedrals=dihedrals, lj_params=lj)


def build_batch(key, mols, atom_fdim):
    n_total = sum(m["n_atoms"] for m in mols)
    n_pad, _, _ = _mpn_tiling(n_total)
    f = jax.random.normal(key, (n_total, atom_fdim), jnp.float32)
    rows, cols, mol_spans = [], [], []
    start = 0
    for m in mols:
        b = m["bonds"] + start
        rows.append(b[:, 0]); cols.append(b[:, 1])
        rows.append(b[:, 1]); cols.append(b[:, 0])
        mol_spans.append((start, m["n_atoms"]))
        start += m["n_atoms"]
    rows = jnp.concatenate(rows)
    cols = jnp.concatenate(cols)
    # Adjacency built directly at the MPN tile-padded size with a single vectorized
    # scatter ({0,1} is exact in bf16) -> no per-forward full-matrix pad copy.
    adj = jnp.zeros((n_pad, n_pad), jnp.bfloat16).at[rows, cols].set(1.0)
    return dict(atom_features=f, adjacency=adj,
                molecules=mols, mol_indeces=mol_spans)


def _allclose(a, b, rtol, atol):
    return bool(jnp.all(jnp.abs(a - b) <= atol + rtol * jnp.abs(b)))


if __name__ == "__main__":
    key = jax.random.PRNGKey(0)
    k_mol1, k_mol2, k_feat, k_mpn, k_b, k_a, k_d, k_p = jax.random.split(key, 8)

    atom_fdim = 32
    mols = [make_chain_molecule(k_mol1, 6), make_chain_molecule(k_mol2, 5)]
    batch = build_batch(k_feat, mols, atom_fdim)

    mpn_params = make_mpn_params(k_mpn, atom_fdim)
    bond_p = make_termnet_params(k_b, input_mult=1, pred_output=ARGS["bond_output"])
    angle_p = make_termnet_params(k_a, input_mult=2, pred_output=ARGS["angle_output"])
    dihedral_p = make_termnet_params(k_d, input_mult=4,
                                     pred_output=ARGS["dihedral_output"])
    pair_p = make_termnet_params(k_p, input_mult=1, pred_output=ARGS["pair_output"])

    out = hitpoly_forward(batch, mpn_params, bond_p, angle_p, dihedral_p, pair_p)
    out = jax.block_until_ready(out)

    ref = hitpoly_forward(batch, mpn_params, bond_p, angle_p, dihedral_p, pair_p,
                          use_pallas=False)
    ref = jax.block_until_ready(ref)

    # shape sanity checks (mirror the asserts in the PyTorch forward) + numerical
    # comparison against the pure-JAX f32 reference (loose tolerance: the kernel
    # path uses bf16 MXU inputs which compound slightly over MPN_DEPTH).
    for mol, res, rres in zip(mols, out, ref):
        assert res["true_charge"].shape == (mol["n_atoms"], 1)
        assert res["bond_params"].shape == (mol["bonds"].shape[0], ARGS["bond_output"])
        assert res["angle_params"].shape == (mol["angles"].shape[0], ARGS["angle_output"])
        assert res["dihedral_params"].shape == (mol["dihedrals"].shape[0],
                                                ARGS["dihedral_output"])
        assert res["pair_params"].shape == (mol["n_atoms"],
                                            ARGS["pair_output"] + 2)
        for name in ("bond_params", "angle_params", "dihedral_params", "pair_params"):
            assert bool(jnp.all(jnp.isfinite(res[name]))), name
            assert _allclose(res[name], rres[name], rtol=0.1, atol=0.1), name
    print("KERNEL_OK")
</pallas_src>

<mosaic_0001>
module attributes {stable_mosaic.version = 11 : i64} {
  func.func @mpn_input_kernel(%arg0: i32, %arg1: memref<128x32xf32, #tpu.memory_space<vmem>>, %arg2: memref<32x32xf32, #tpu.memory_space<vmem>>, %arg3: memref<128x32xf32, #tpu.memory_space<vmem>>, %arg4: memref<128x32xbf16, #tpu.memory_space<vmem>>) attributes {dimension_semantics = [#tpu.dimension_semantics<parallel>], iteration_bounds = array<i64: 1>, scalar_prefetch = 0 : i64, scratch_operands = 0 : i64, tpu.core_type = #tpu.core_type<tc>, window_params = [{transform_indices = @transform_0, window_bounds = array<i64: 128, 32>}, {pipeline_mode = #tpu.pipeline_mode<synchronous>, transform_indices = @transform_1, window_bounds = array<i64: 32, 32>}, {transform_indices = @transform_2, window_bounds = array<i64: 128, 32>}, {transform_indices = @transform_3, window_bounds = array<i64: 128, 32>}]} {
    %c0 = arith.constant 0 : index
    %c0_0 = arith.constant 0 : index
    %0 = vector.load %arg1[%c0, %c0_0] : memref<128x32xf32, #tpu.memory_space<vmem>>, vector<128x32xf32>
    %c0_1 = arith.constant 0 : index
    %c0_2 = arith.constant 0 : index
    %1 = vector.load %arg2[%c0_1, %c0_2] : memref<32x32xf32, #tpu.memory_space<vmem>>, vector<32x32xf32>
    %cst = arith.constant dense<0.000000e+00> : vector<128x32xf32>
    %2 = tpu.matmul %0, %1, %cst {dimension_numbers = #tpu.dot_dimension_numbers<[1], [0], [0], [1], [0, 0, 1, 1], [], []>} : vector<128x32xf32>, vector<32x32xf32>, vector<128x32xf32> -> vector<128x32xf32>
    %cst_3 = arith.constant 0.000000e+00 : f32
    %3 = vector.broadcast %cst_3 : f32 to vector<128x32xf32>
    %4 = arith.maximumf %2, %3 : vector<128x32xf32>
    %c0_4 = arith.constant 0 : index
    %c0_5 = arith.constant 0 : index
    %5 = vector.load %arg3[%c0_4, %c0_5] : memref<128x32xf32, #tpu.memory_space<vmem>>, vector<128x32xf32>
    tpu.vector_store %arg3[%c0_4, %c0_5], %4 {strides = array<i32>} : memref<128x32xf32, #tpu.memory_space<vmem>>, vector<128x32xf32>,
    %6 = arith.truncf %4 : vector<128x32xf32> to vector<128x32xbf16>
    %c0_6 = arith.constant 0 : index
    %c0_7 = arith.constant 0 : index
    %7 = vector.load %arg4[%c0_6, %c0_7] : memref<128x32xbf16, #tpu.memory_space<vmem>>, vector<128x32xbf16>
    tpu.vector_store %arg4[%c0_6, %c0_7], %6 {strides = array<i32>} : memref<128x32xbf16, #tpu.memory_space<vmem>>, vector<128x32xbf16>,
    return
  }
  func.func @transform_0(%arg0: i32) -> (i32, i32) {
    %c0_i32 = arith.constant 0 : i32
    %c0_i32_0 = arith.constant 0 : i32
    return %arg0, %c0_i32 : i32, i32
  }
  func.func @transform_1(%arg0: i32) -> (i32, i32) {
    %c0_i32 = arith.constant 0 : i32
    %c0_i32_0 = arith.constant 0 : i32
    %c0_i32_1 = arith.constant 0 : i32
    return %c0_i32, %c0_i32_0 : i32, i32
  }
  func.func @transform_2(%arg0: i32) -> (i32, i32) {
    %c0_i32 = arith.constant 0 : i32
    %c0_i32_0 = arith.constant 0 : i32
    return %arg0, %c0_i32 : i32, i32
  }
  func.func @transform_3(%arg0: i32) -> (i32, i32) {
    %c0_i32 = arith.constant 0 : i32
    %c0_i32_0 = arith.constant 0 : i32
    return %arg0, %c0_i32 : i32, i32
  }
}

</mosaic_0001>

<bundles_post_ra>
// kernel: tpu_custom_call.1
= control target key start
LH: loop header
LB: loop body
LE: loop exit
PB: predicated region body
PF: predicated region fallthrough
CT: control target
= control target key end

     0   :  { %vm33_vm0 = vcmask 261120   ;;  %vm323_vm1 = vcmask 257024   ;;  %s680_s1 = inlined_call_operand.vmem [shape: f32[32,32], index: 1, kind: input, shape index: {}]   ;;  %s681_s0 = inlined_call_operand.vmem [shape: f32[128,32], index: 0, kind: input, shape index: {}]   ;;  %s682_s2 = inlined_call_operand.vmem [shape: f32[128,32], index: 2, kind: output, shape index: {0}]   ;;  %s683_s3 = inlined_call_operand.vmem [shape: bf16[128,32], index: 3, kind: output, shape index: {1}]  }
   0x1   :  { %v32_v0 = vld [vmem:[%s680_s1 + $0x18] sm:$0xff]  ;;  %v31_v1 = vld [vmem:[%s680_s1 + $0x10] sm:$0xff]  ;;  %v30_v2 = vld [vmem:[%s680_s1 + $0x8] sm:$0xff] }
   0x2   :  { %416 = vmatprep.subr.mxu0 %v32_v0  ;;  %448 = vmatprep.subr.mxu1 %v32_v0  ;;  %v29_v3 = vld [vmem:[%s680_s1] sm:$0xff]  ;;  %v14_v6 = vld [vmem:[%s681_s0 + $0x8] sm:$0xff]  ;;  %v15_v8 = vld [vmem:[%s681_s0 + $0x10] sm:$0xff] }
   0x3   :  { %417 = vmatpush3.msra.mxu0 %v32_v0  ;;  %452 = vmatpush3.msra.mxu1 %v32_v0  ;;  %v13_v4 = vld [vmem:[%s681_s0] sm:$0xff]  ;;  %v22_v7 = vld [vmem:[%s681_s0 + $0x48] sm:$0xff]  ;;  %v23_v9 = vld [vmem:[%s681_s0 + $0x50] sm:$0xff] }
   0x4   :  { %418 = vmatprep.subr.mxu0 %v31_v1  ;;  %449 = vmatprep.subr.mxu1 %v31_v1  ;;  %v21_v5 = vld [vmem:[%s681_s0 + $0x40] sm:$0xff]  ;;  %v16_v10 = vld [vmem:[%s681_s0 + $0x18] sm:$0xff]  ;;  %v18_v14 = vld [vmem:[%s681_s0 + $0x28] sm:$0xff] }
   0x5   :  { %419 = vmatpush3.msra.mxu0 %v31_v1  ;;  %453 = vmatpush3.msra.mxu1 %v31_v1  ;;  %v24_v11 = vld [vmem:[%s681_s0 + $0x58] sm:$0xff]  ;;  %v17_v12 = vld [vmem:[%s681_s0 + $0x20] sm:$0xff]  ;;  %v26_v15 = vld [vmem:[%s681_s0 + $0x68] sm:$0xff] }
   0x6   :  { %420 = vmatprep.subr.mxu0 %v30_v2  ;;  %450 = vmatprep.subr.mxu1 %v30_v2  ;;  %v25_v13 = vld [vmem:[%s681_s0 + $0x60] sm:$0xff]  ;;  %v19_v16 = vld [vmem:[%s681_s0 + $0x30] sm:$0xff]  ;;  %v20_v18 = vld [vmem:[%s681_s0 + $0x38] sm:$0xff] }
   0x7   :  { %421 = vmatpush3.msra.mxu0 %v30_v2  ;;  %454 = vmatpush3.msra.mxu1 %v30_v2  ;;  %v27_v17 = vld [vmem:[%s681_s0 + $0x70] sm:$0xff]  ;;  %v28_v19 = vld [vmem:[%s681_s0 + $0x78] sm:$0xff] }
   0x8   :  { %422 = vmatprep.subr.mxu0 %v29_v3  ;;  %451 = vmatprep.subr.mxu1 %v29_v3 }
   0x9   :  { %423 = vmatpush3.msra.mxu0 %v29_v3  ;;  %455 = vmatpush3.msra.mxu1 %v29_v3 }
   0xa   :  { %424 = vmatprep.mubr.msk.f32.mxu0 %vm33_vm0, %v13_v4  ;;  %436 = vmatprep.mubr.msk.f32.mxu1 %vm33_vm0, %v21_v5 }
   0xb   :  { %425 = vmatmul.mubr.msk.f32.vlgmr.msra.gmra.mxu0 %vm33_vm0, %v14_v6  ;;  %437 = vmatmul.mubr.msk.f32.vlgmr.msra.gmra.mxu1 %vm33_vm0, %v22_v7 }
   0xc   :  { %427 = vmatprep.mubr.msk.f32.mxu0 %vm33_vm0, %v15_v8  ;;  %439 = vmatprep.mubr.msk.f32.mxu1 %vm33_vm0, %v23_v9 }
   0xf   :  { %428 = vmatmul.mubr.msk.f32.gmra.mxu0 %vm33_vm0, %v16_v10  ;;  %440 = vmatmul.mubr.msk.f32.gmra.mxu1 %vm33_vm0, %v24_v11 }
  0x10   :  { %430 = vmatprep.mubr.msk.f32.mxu0 %vm33_vm0, %v17_v12  ;;  %442 = vmatprep.mubr.msk.f32.mxu1 %vm33_vm0, %v25_v13 }
  0x13   :  { %431 = vmatmul.mubr.msk.f32.gmra.mxu0 %vm33_vm0, %v18_v14  ;;  %443 = vmatmul.mubr.msk.f32.gmra.mxu1 %vm33_vm0, %v26_v15 }
  0x14   :  { %433 = vmatprep.mubr.msk.f32.mxu0 %vm33_vm0, %v19_v16  ;;  %445 = vmatprep.mubr.msk.f32.mxu1 %vm33_vm0, %v27_v17 }
  0x17   :  { %434 = vmatmul.mubr.msk.f32.gmra.mxu0 %vm33_vm0, %v20_v18  ;;  %446 = vmatmul.mubr.msk.f32.gmra.mxu1 %vm33_vm0, %v28_v19 }
  0xcb   :  { %v426_v20 = vpop.f32.mrf.mxu0  ;;  %v438_v21 = vpop.f32.mrf.mxu1 }
  0xcc   :  { %v228_v22 = vmax.f32 %v426_v20, 0.0  ;;  %v236_v23 = vmax.f32 %v438_v21, 0.0 }
  0xcd   :  { %v148_v24 = vpop.f32.mrf.mxu0  ;;  %v188_v25 = vpop.f32.mrf.mxu1 }
  0xce   :  { %244 = vst.msk [vmem:[%s682_s2 + $0x8] sm:$0xff] %vm33_vm0, %v228_v22  ;;  %v381_v26 = vpack.c.bf16 %v228_v22, %v228_v22  ;;  %252 = vst.msk [vmem:[%s682_s2 + $0x48] sm:$0xff] %vm33_vm0, %v236_v23  ;;  %v389_v27 = vpack.c.bf16 %v236_v23, %v236_v23  ;;  %v227_v28 = vmax.f32 %v148_v24, 0.0  ;;  %v235_v29 = vmax.f32 %v188_v25, 0.0 }
  0xcf   :  { %v429_v30 = vpop.f32.mrf.mxu0  ;;  %v441_v31 = vpop.f32.mrf.mxu1 }
  0xd0   :  { %325 = vst.msk [vmem:[%s683_s3 + $0x4] sm:$0xf] %vm323_vm1, %v381_v26  ;;  %333 = vst.msk [vmem:[%s683_s3 + $0x24] sm:$0xf] %vm323_vm1, %v389_v27  ;;  %v380_v32 = vpack.c.bf16 %v227_v28, %v227_v28  ;;  %v388_v33 = vpack.c.bf16 %v235_v29, %v235_v29  ;;  %v230_v34 = vmax.f32 %v429_v30, 0.0  ;;  %v238_v35 = vmax.f32 %v441_v31, 0.0 }
  0xd1   :  { %243 = vst.msk [vmem:[%s682_s2] sm:$0xff] %vm33_vm0, %v227_v28  ;;  %251 = vst.msk [vmem:[%s682_s2 + $0x40] sm:$0xff] %vm33_vm0, %v235_v29  ;;  %v158_v36 = vpop.f32.mrf.mxu0  ;;  %v198_v37 = vpop.f32.mrf.mxu1 }
  0xd2   :  { %324 = vst.msk [vmem:[%s683_s3] sm:$0xf] %vm323_vm1, %v380_v32  ;;  %332 = vst.msk [vmem:[%s683_s3 + $0x20] sm:$0xf] %vm323_vm1, %v388_v33  ;;  %v383_v38 = vpack.c.bf16 %v230_v34, %v230_v34  ;;  %v391_v39 = vpack.c.bf16 %v238_v35, %v238_v35  ;;  %v229_v40 = vmax.f32 %v158_v36, 0.0  ;;  %v237_v41 = vmax.f32 %v198_v37, 0.0 }
  0xd3   :  { %246 = vst.msk [vmem:[%s682_s2 + $0x18] sm:$0xff] %vm33_vm0, %v230_v34  ;;  %254 = vst.msk [vmem:[%s682_s2 + $0x58] sm:$0xff] %vm33_vm0, %v238_v35  ;;  %v432_v42 = vpop.f32.mrf.mxu0  ;;  %v444_v43 = vpop.f32.mrf.mxu1 }
  0xd4   :  { %327 = vst.msk [vmem:[%s683_s3 + $0xc] sm:$0xf] %vm323_vm1, %v383_v38  ;;  %335 = vst.msk [vmem:[%s683_s3 + $0x2c] sm:$0xf] %vm323_vm1, %v391_v39  ;;  %v382_v44 = vpack.c.bf16 %v229_v40, %v229_v40  ;;  %v390_v45 = vpack.c.bf16 %v237_v41, %v237_v41  ;;  %v232_v46 = vmax.f32 %v432_v42, 0.0  ;;  %v240_v47 = vmax.f32 %v444_v43, 0.0 }
  0xd5   :  { %245 = vst.msk [vmem:[%s682_s2 + $0x10] sm:$0xff] %vm33_vm0, %v229_v40  ;;  %253 = vst.msk [vmem:[%s682_s2 + $0x50] sm:$0xff] %vm33_vm0, %v237_v41  ;;  %v168_v48 = vpop.f32.mrf.mxu0  ;;  %v208_v49 = vpop.f32.mrf.mxu1 }
  0xd6   :  { %326 = vst.msk [vmem:[%s683_s3 + $0x8] sm:$0xf] %vm323_vm1, %v382_v44  ;;  %334 = vst.msk [vmem:[%s683_s3 + $0x28] sm:$0xf] %vm323_vm1, %v390_v45  ;;  %v385_v50 = vpack.c.bf16 %v232_v46, %v232_v46  ;;  %v393_v51 = vpack.c.bf16 %v240_v47, %v240_v47  ;;  %v231_v52 = vmax.f32 %v168_v48, 0.0  ;;  %v239_v53 = vmax.f32 %v208_v49, 0.0 }
  0xd7   :  { %248 = vst.msk [vmem:[%s682_s2 + $0x28] sm:$0xff] %vm33_vm0, %v232_v46  ;;  %256 = vst.msk [vmem:[%s682_s2 + $0x68] sm:$0xff] %vm33_vm0, %v240_v47  ;;  %v435_v54 = vpop.f32.mrf.mxu0  ;;  %v447_v55 = vpop.f32.mrf.mxu1 }
  0xd8   :  { %329 = vst.msk [vmem:[%s683_s3 + $0x14] sm:$0xf] %vm323_vm1, %v385_v50  ;;  %337 = vst.msk [vmem:[%s683_s3 + $0x34] sm:$0xf] %vm323_vm1, %v393_v51  ;;  %v384_v56 = vpack.c.bf16 %v231_v52, %v231_v52  ;;  %v392_v57 = vpack.c.bf16 %v239_v53, %v239_v53  ;;  %v234_v58 = vmax.f32 %v435_v54, 0.0  ;;  %v242_v59 = vmax.f32 %v447_v55, 0.0 }
  0xd9   :  { %247 = vst.msk [vmem:[%s682_s2 + $0x20] sm:$0xff] %vm33_vm0, %v231_v52  ;;  %255 = vst.msk [vmem:[%s682_s2 + $0x60] sm:$0xff] %vm33_vm0, %v239_v53  ;;  %v178_v60 = vpop.f32.mrf.mxu0  ;;  %v218_v61 = vpop.f32.mrf.mxu1 }
  0xda   :  { %328 = vst.msk [vmem:[%s683_s3 + $0x10] sm:$0xf] %vm323_vm1, %v384_v56  ;;  %336 = vst.msk [vmem:[%s683_s3 + $0x30] sm:$0xf] %vm323_vm1, %v392_v57  ;;  %v387_v62 = vpack.c.bf16 %v234_v58, %v234_v58  ;;  %v395_v63 = vpack.c.bf16 %v242_v59, %v242_v59  ;;  %v233_v0 = vmax.f32 %v178_v60, 0.0  ;;  %v241_v1 = vmax.f32 %v218_v61, 0.0 }
  0xdb   :  { %250 = vst.msk [vmem:[%s682_s2 + $0x38] sm:$0xff] %vm33_vm0, %v234_v58  ;;  %258 = vst.msk [vmem:[%s682_s2 + $0x78] sm:$0xff] %vm33_vm0, %v242_v59 }
  0xdc   :  { %331 = vst.msk [vmem:[%s683_s3 + $0x1c] sm:$0xf] %vm323_vm1, %v387_v62  ;;  %339 = vst.msk [vmem:[%s683_s3 + $0x3c] sm:$0xf] %vm323_vm1, %v395_v63  ;;  %v386_v2 = vpack.c.bf16 %v233_v0, %v233_v0  ;;  %v394_v3 = vpack.c.bf16 %v241_v1, %v241_v1 }
  0xdd   :  { %249 = vst.msk [vmem:[%s682_s2 + $0x30] sm:$0xff] %vm33_vm0, %v233_v0  ;;  %257 = vst.msk [vmem:[%s682_s2 + $0x70] sm:$0xff] %vm33_vm0, %v241_v1 }
  0xde   :  { %330 = vst.msk [vmem:[%s683_s3 + $0x18] sm:$0xf] %vm323_vm1, %v386_v2  ;;  %338 = vst.msk [vmem:[%s683_s3 + $0x38] sm:$0xf] %vm323_vm1, %v394_v3 }

</bundles_post_ra>
